<compile_context>
chip_gen: v6e
topology: v6e:2x2x1
jax: 0.10.0
libtpu: 0.0.40
codegen_flags: <defaults>
</compile_context>

<pallas_src>
import jax
import jax.numpy as jnp
from jax.experimental import pallas as pl
from jax.experimental.pallas import tpu as pltpu

SUBLANE = 8          # sublane width (second-to-last dim tiling unit)
H1, H2 = 128, 256    # hidden sizes fixed by the PyTorch module


def _round_up(x, m):
    return (x + m - 1) // m * m


def actor_kernel(x_ref, w1_ref, w2_ref, w3_ref, b_ref, probs_ref):
    # x: [tile_b, A] f32; weights bf16; biases concatenated f32 [1, H1+H2+A].
    x = x_ref[...].astype(jnp.bfloat16)

    b1 = b_ref[:, :H1]                 # [1, 128]
    b2 = b_ref[:, H1:H1 + H2]          # [1, 256]
    b3 = b_ref[:, H1 + H2:]            # [1, A]

    # Linear1 + ReLU   (bf16 MXU inputs, f32 accumulate, f32 elementwise)
    h1 = jnp.dot(x, w1_ref[...], preferred_element_type=jnp.float32)
    h1 = jnp.maximum(h1 + b1, 0.0)                                 # [tb, 128]

    # Linear2 + ReLU
    h2 = jnp.dot(h1.astype(jnp.bfloat16), w2_ref[...],
                 preferred_element_type=jnp.float32)
    h2 = jnp.maximum(h2 + b2, 0.0)                                 # [tb, 256]

    # Linear3 (logits)
    logits = jnp.dot(h2.astype(jnp.bfloat16), w3_ref[...],
                     preferred_element_type=jnp.float32) + b3      # [tb, A]

    # Numerically-stable softmax along the last dim; exact divide so rows sum
    # to 1 to f32 precision (safe for downstream Categorical sampling).
    m = jnp.max(logits, axis=-1, keepdims=True)
    e = jnp.exp(logits - m)
    denom = jnp.sum(e, axis=-1, keepdims=True)
    probs_ref[...] = (e / denom).astype(probs_ref.dtype)


def init_params(key, action_size):
    """Logical (unpadded) f32 params mimicking nn.Linear's U(-1/sqrt(fan_in))
    init. Weights are stored [in, out] (transposed vs PyTorch's [out, in])."""
    dims = [(action_size, H1), (H1, H2), (H2, action_size)]
    params = []
    for fan_in, fan_out in dims:
        key, kw, kb = jax.random.split(key, 3)
        bound = 1.0 / jnp.sqrt(fan_in)
        w = jax.random.uniform(kw, (fan_in, fan_out), jnp.float32,
                               -bound, bound)
        b = jax.random.uniform(kb, (1, fan_out), jnp.float32, -bound, bound)
        params += [w, b]
    return tuple(params)


def prepare_params(params):
    """Cast weights to bf16; concatenate biases into one f32 stream."""
    w1, b1, w2, b2, w3, b3 = params
    bcat = jnp.concatenate([b1, b2, b3], axis=-1)    # [1, H1+H2+A] f32
    return (w1.astype(jnp.bfloat16), w2.astype(jnp.bfloat16),
            w3.astype(jnp.bfloat16), bcat)


def actor_forward(state, kernel_params, *, tile_b=1024):
    """Returns Categorical probabilities, shape [B, action_size]."""
    w1, w2, w3, bcat = kernel_params
    B, A = state.shape
    assert w1.shape == (A, H1) and w3.shape == (H2, A)

    # Batch tiling: round the batch up to the sublane width; cap the tile so
    # there are >= 2 grid steps when the batch is big enough (v7x: 2 TCs),
    # and never exceed tile_b (amortizes per-step overhead at large B).
    b8 = _round_up(B, SUBLANE)
    half = _round_up(-(-b8 // 2), SUBLANE)
    tb = max(SUBLANE, min(tile_b, half))
    b_pad = _round_up(b8, tb)

    x = state
    if b_pad != B:
        x = jnp.zeros((b_pad, A), state.dtype).at[:B, :].set(state)

    const = lambda shape: pl.BlockSpec(shape, lambda i: (0, 0))

    probs = pl.pallas_call(
        actor_kernel,
        out_shape=jax.ShapeDtypeStruct((b_pad, A), jnp.float32),
        grid=(b_pad // tb,),
        in_specs=[
            pl.BlockSpec((tb, A), lambda i: (i, 0)),   # state tile [tb, A]
            const((A, H1)),                            # W1  (VMEM-resident)
            const((H1, H2)),                           # W2  (VMEM-resident)
            const((H2, A)),                            # W3  (VMEM-resident)
            const((1, H1 + H2 + A)),                   # biases (one DMA)
        ],
        out_specs=pl.BlockSpec((tb, A), lambda i: (i, 0)),
        compiler_params=pltpu.CompilerParams(
            dimension_semantics=("parallel",)),
    )(x, w1, w2, w3, bcat)

    return probs if b_pad == B else probs[:B]


def ref_forward(state, params):
    """Pure-JAX reference with the same bf16-at-MXU casting as the kernel."""
    w1, b1, w2, b2, w3, b3 = params
    bf = jnp.bfloat16
    h1 = jax.nn.relu(jnp.dot(state.astype(bf), w1.astype(bf),
                             preferred_element_type=jnp.float32) + b1)
    h2 = jax.nn.relu(jnp.dot(h1.astype(bf), w2.astype(bf),
                             preferred_element_type=jnp.float32) + b2)
    logits = jnp.dot(h2.astype(bf), w3.astype(bf),
                     preferred_element_type=jnp.float32) + b3
    return jax.nn.softmax(logits, axis=-1)


if __name__ == "__main__":
    key = jax.random.PRNGKey(0)
    k_state, k_params = jax.random.split(key)

    # data['word'].x.size()[1]  ->  action_size (feature dim of the word nodes)
    batch = 8
    action_size = 16

    state = jax.random.normal(k_state, (batch, action_size), jnp.float32)
    params = init_params(k_params, action_size)
    kparams = prepare_params(params)

    probs = actor_forward(state, kparams)
    probs = jax.block_until_ready(probs)

    # Sanity: valid Categorical — probs >= 0, rows sum to 1, matches reference.
    ref = ref_forward(state, params)
    assert probs.shape == (batch, action_size)
    assert bool(jnp.all(probs >= 0.0))
    assert jnp.allclose(jnp.sum(probs, axis=-1), 1.0, atol=1e-3)
    assert jnp.allclose(probs, ref, atol=2e-3)

    # TODO(synk): Categorical sampling / log_prob is left to the caller; the
    # kernel returns the probabilities that parameterize the distribution.
    print("KERNEL_OK")
</pallas_src>

<mosaic_0001>
module attributes {stable_mosaic.version = 11 : i64} {
  func.func @actor_kernel(%arg0: i32, %arg1: memref<8x16xf32, #tpu.memory_space<vmem>>, %arg2: memref<16x128xbf16, #tpu.memory_space<vmem>>, %arg3: memref<128x256xbf16, #tpu.memory_space<vmem>>, %arg4: memref<256x16xbf16, #tpu.memory_space<vmem>>, %arg5: memref<1x400xf32, #tpu.memory_space<vmem>>, %arg6: memref<8x16xf32, #tpu.memory_space<vmem>>) attributes {dimension_semantics = [#tpu.dimension_semantics<parallel>], iteration_bounds = array<i64: 1>, scalar_prefetch = 0 : i64, scratch_operands = 0 : i64, tpu.core_type = #tpu.core_type<tc>, window_params = [{transform_indices = @transform_0, window_bounds = array<i64: 8, 16>}, {pipeline_mode = #tpu.pipeline_mode<synchronous>, transform_indices = @transform_1, window_bounds = array<i64: 16, 128>}, {pipeline_mode = #tpu.pipeline_mode<synchronous>, transform_indices = @transform_2, window_bounds = array<i64: 128, 256>}, {pipeline_mode = #tpu.pipeline_mode<synchronous>, transform_indices = @transform_3, window_bounds = array<i64: 256, 16>}, {pipeline_mode = #tpu.pipeline_mode<synchronous>, transform_indices = @transform_4, window_bounds = array<i64: 1, 400>}, {transform_indices = @transform_5, window_bounds = array<i64: 8, 16>}]} {
    %c0 = arith.constant 0 : index
    %c0_0 = arith.constant 0 : index
    %0 = vector.load %arg1[%c0, %c0_0] : memref<8x16xf32, #tpu.memory_space<vmem>>, vector<8x16xf32>
    %1 = arith.truncf %0 : vector<8x16xf32> to vector<8x16xbf16>
    %c0_1 = arith.constant 0 : index
    %c0_2 = arith.constant 0 : index
    %2 = vector.load %arg5[%c0_1, %c0_2] : memref<1x400xf32, #tpu.memory_space<vmem>>, vector<1x128xf32>
    %c0_3 = arith.constant 0 : index
    %c128 = arith.constant 128 : index
    %3 = vector.load %arg5[%c0_3, %c128] : memref<1x400xf32, #tpu.memory_space<vmem>>, vector<1x256xf32>
    %c0_4 = arith.constant 0 : index
    %c384 = arith.constant 384 : index
    %4 = vector.load %arg5[%c0_4, %c384] : memref<1x400xf32, #tpu.memory_space<vmem>>, vector<1x16xf32>
    %c0_5 = arith.constant 0 : index
    %c0_6 = arith.constant 0 : index
    %5 = vector.load %arg2[%c0_5, %c0_6] : memref<16x128xbf16, #tpu.memory_space<vmem>>, vector<16x128xbf16>
    %cst = arith.constant dense<0.000000e+00> : vector<8x128xf32>
    %6 = tpu.matmul %1, %5, %cst {dimension_numbers = #tpu.dot_dimension_numbers<[1], [0], [0], [1], [0, 0, 1, 1], [], []>} : vector<8x16xbf16>, vector<16x128xbf16>, vector<8x128xf32> -> vector<8x128xf32>
    %7 = vector.broadcast %2 : vector<1x128xf32> to vector<8x128xf32>
    %8 = arith.addf %6, %7 : vector<8x128xf32>
    %cst_7 = arith.constant 0.000000e+00 : f32
    %9 = vector.broadcast %cst_7 : f32 to vector<8x128xf32>
    %10 = arith.maximumf %8, %9 : vector<8x128xf32>
    %11 = arith.truncf %10 : vector<8x128xf32> to vector<8x128xbf16>
    %c0_8 = arith.constant 0 : index
    %c0_9 = arith.constant 0 : index
    %12 = vector.load %arg3[%c0_8, %c0_9] : memref<128x256xbf16, #tpu.memory_space<vmem>>, vector<128x256xbf16>
    %cst_10 = arith.constant dense<0.000000e+00> : vector<8x256xf32>
    %13 = tpu.matmul %11, %12, %cst_10 {dimension_numbers = #tpu.dot_dimension_numbers<[1], [0], [0], [1], [0, 0, 1, 1], [], []>} : vector<8x128xbf16>, vector<128x256xbf16>, vector<8x256xf32> -> vector<8x256xf32>
    %14 = vector.broadcast %3 : vector<1x256xf32> to vector<8x256xf32>
    %15 = arith.addf %13, %14 : vector<8x256xf32>
    %cst_11 = arith.constant 0.000000e+00 : f32
    %16 = vector.broadcast %cst_11 : f32 to vector<8x256xf32>
    %17 = arith.maximumf %15, %16 : vector<8x256xf32>
    %18 = arith.truncf %17 : vector<8x256xf32> to vector<8x256xbf16>
    %c0_12 = arith.constant 0 : index
    %c0_13 = arith.constant 0 : index
    %19 = vector.load %arg4[%c0_12, %c0_13] : memref<256x16xbf16, #tpu.memory_space<vmem>>, vector<256x16xbf16>
    %cst_14 = arith.constant dense<0.000000e+00> : vector<8x16xf32>
    %20 = tpu.matmul %18, %19, %cst_14 {dimension_numbers = #tpu.dot_dimension_numbers<[1], [0], [0], [1], [0, 0, 1, 1], [], []>} : vector<8x256xbf16>, vector<256x16xbf16>, vector<8x16xf32> -> vector<8x16xf32>
    %21 = vector.broadcast %4 : vector<1x16xf32> to vector<8x16xf32>
    %22 = arith.addf %20, %21 : vector<8x16xf32>
    %cst_15 = arith.constant dense<0xFF800000> : vector<8xf32>
    %23 = vector.multi_reduction <maximumf>, %22, %cst_15 [1] : vector<8x16xf32> to vector<8xf32>
    %24 = vector.shape_cast %23 : vector<8xf32> to vector<8x1xf32>
    %25 = vector.broadcast %24 : vector<8x1xf32> to vector<8x16xf32>
    %26 = arith.subf %22, %25 : vector<8x16xf32>
    %27 = math.exp %26 : vector<8x16xf32>
    %cst_16 = arith.constant dense<0.000000e+00> : vector<8xf32>
    %28 = vector.multi_reduction <add>, %27, %cst_16 [1] : vector<8x16xf32> to vector<8xf32>
    %29 = vector.shape_cast %28 : vector<8xf32> to vector<8x1xf32>
    %30 = vector.broadcast %29 : vector<8x1xf32> to vector<8x16xf32>
    %31 = arith.divf %27, %30 : vector<8x16xf32>
    %c0_17 = arith.constant 0 : index
    %c0_18 = arith.constant 0 : index
    %32 = vector.load %arg6[%c0_17, %c0_18] : memref<8x16xf32, #tpu.memory_space<vmem>>, vector<8x16xf32>
    tpu.vector_store %arg6[%c0_17, %c0_18], %31 {strides = array<i32>} : memref<8x16xf32, #tpu.memory_space<vmem>>, vector<8x16xf32>,
    return
  }
  func.func @transform_0(%arg0: i32) -> (i32, i32) {
    %c0_i32 = arith.constant 0 : i32
    %c0_i32_0 = arith.constant 0 : i32
    return %arg0, %c0_i32 : i32, i32
  }
  func.func @transform_1(%arg0: i32) -> (i32, i32) {
    %c0_i32 = arith.constant 0 : i32
    %c0_i32_0 = arith.constant 0 : i32
    %c0_i32_1 = arith.constant 0 : i32
    return %c0_i32, %c0_i32_0 : i32, i32
  }
  func.func @transform_2(%arg0: i32) -> (i32, i32) {
    %c0_i32 = arith.constant 0 : i32
    %c0_i32_0 = arith.constant 0 : i32
    %c0_i32_1 = arith.constant 0 : i32
    return %c0_i32, %c0_i32_0 : i32, i32
  }
  func.func @transform_3(%arg0: i32) -> (i32, i32) {
    %c0_i32 = arith.constant 0 : i32
    %c0_i32_0 = arith.constant 0 : i32
    %c0_i32_1 = arith.constant 0 : i32
    return %c0_i32, %c0_i32_0 : i32, i32
  }
  func.func @transform_4(%arg0: i32) -> (i32, i32) {
    %c0_i32 = arith.constant 0 : i32
    %c0_i32_0 = arith.constant 0 : i32
    %c0_i32_1 = arith.constant 0 : i32
    return %c0_i32, %c0_i32_0 : i32, i32
  }
  func.func @transform_5(%arg0: i32) -> (i32, i32) {
    %c0_i32 = arith.constant 0 : i32
    %c0_i32_0 = arith.constant 0 : i32
    return %arg0, %c0_i32 : i32, i32
  }
}

</mosaic_0001>

<bundles_post_ra>
// kernel: tpu_custom_call.1
= control target key start
LH: loop header
LB: loop body
LE: loop exit
PB: predicated region body
PF: predicated region fallthrough
CT: control target
= control target key end

     0   :  { %v576_v1 = vmov 0.0   ;;  %vm577_vm0 = vmmov 0   ;;  %vm41_vm1 = vcmask 130048   ;;  %s728_s0 = inlined_call_operand.vmem [shape: f32[8,16], index: 0, kind: input, shape index: {}]   ;;  %s729_s1 = inlined_call_operand.vmem [shape: bf16[16,128], index: 1, kind: input, shape index: {}]   ;;  %s730_s2 = inlined_call_operand.vmem [shape: bf16[128,256], index: 2, kind: input, shape index: {}]   ;;  %s731_s3 = inlined_call_operand.vmem [shape: bf16[256,16], index: 3, kind: input, shape index: {}]   ;;  %s732_s4 = inlined_call_operand.vmem [shape: f32[1,400], index: 4, kind: input, shape index: {}]   ;;  %s733_s5 = inlined_call_operand.hbm [shape: f32[8,16], index: 5, kind: output, shape index: {}]  }
   0x1   :  { %v509_v0 = vld [vmem:[%s729_s1] sm:$0xff]   ;;  %499 = vmatprep.subr.bf16.mxu0 %v576_v1  ;;  %501 = vmatprep.mubr.msk.bf16.mxu0 %vm577_vm0, %v576_v1  ;;  %v510_v4 = vld [vmem:[%s730_s2 + $0x74] ss:$8 sps:$4 sm:$0xff]   ;;  %v512_v5 = vld [vmem:[%s730_s2 + $0x70] ss:$8 sps:$4 sm:$0xff]  }
   0x2   :  { %v22_v2 = vld [vmem:[%s728_s0] sm:$0xff]  ;;  %500 = vmatpush3.bf16.msra.mxu0 %v509_v0  ;;  %194 = vmatprep.subr.bf16.mxu1 %v510_v4  ;;  %v516_v8 = vld [vmem:[%s730_s2 + $0x54] ss:$8 sps:$4 sm:$0xff]   ;;  %v518_v9 = vld [vmem:[%s730_s2 + $0x50] ss:$8 sps:$4 sm:$0xff]  }
   0x3   :  { %v23_v3 = vpack.c.bf16 %v22_v2, %v22_v2  ;;  %v513_v6 = vld [vmem:[%s730_s2 + $0x64] ss:$8 sps:$4 sm:$0xff]   ;;  %195 = vmatpush1.bf16.msra.mxu1 %v512_v5  ;;  %v515_v7 = vld [vmem:[%s730_s2 + $0x60] ss:$8 sps:$4 sm:$0xff]   ;;  %v522_v12 = vld [vmem:[%s730_s2 + $0x34] ss:$8 sps:$4 sm:$0xff]  }
   0x4   :  { %196 = vmatprep.subr.bf16.mxu1 %v513_v6  ;;  %v519_v10 = vld [vmem:[%s730_s2 + $0x44] ss:$8 sps:$4 sm:$0xff]   ;;  %v521_v11 = vld [vmem:[%s730_s2 + $0x40] ss:$8 sps:$4 sm:$0xff]   ;;  %v524_v13 = vld [vmem:[%s730_s2 + $0x30] ss:$8 sps:$4 sm:$0xff]  }
   0x5   :  { %502 = vmatmul.mubr.msk.bf16.vlgmr.msra.gmra.mxu0 %vm41_vm1, %v23_v3  ;;  %v525_v14 = vld [vmem:[%s730_s2 + $0x24] ss:$8 sps:$4 sm:$0xff]   ;;  %v527_v15 = vld [vmem:[%s730_s2 + $0x20] ss:$8 sps:$4 sm:$0xff]   ;;  %v528_v16 = vld [vmem:[%s730_s2 + $0x14] ss:$8 sps:$4 sm:$0xff]  }
   0x7   :  { %197 = vmatpush1.bf16.msra.mxu1 %v515_v7 }
   0x8   :  { %198 = vmatprep.subr.bf16.mxu1 %v516_v8 }
   0xb   :  { %199 = vmatpush1.bf16.msra.mxu1 %v518_v9 }
   0xc   :  { %200 = vmatprep.subr.bf16.mxu1 %v519_v10 }
   0xf   :  { %201 = vmatpush1.bf16.msra.mxu1 %v521_v11 }
  0x10   :  { %202 = vmatprep.subr.bf16.mxu1 %v522_v12 }
  0x13   :  { %203 = vmatpush1.bf16.msra.mxu1 %v524_v13 }
  0x14   :  { %204 = vmatprep.subr.bf16.mxu1 %v525_v14 }
  0x15   :  { %10 = vsyncpa [#allocation3], 0  ;;  %v530_v17 = vld [vmem:[%s730_s2 + $0x10] ss:$8 sps:$4 sm:$0xff]   ;;  %v531_v18 = vld [vmem:[%s730_s2 + $0x4] ss:$8 sps:$4 sm:$0xff]   ;;  %v104_v45 = vlaneseq }
  0x16   :  { %v533_v19 = vld [vmem:[%s730_s2] ss:$8 sps:$4 sm:$0xff]   ;;  %v578_v20 = vmov 0   ;;  %v534_v21 = vld [vmem:[%s731_s3 + $0x78] sm:$0xff]   ;;  %v536_v23 = vld [vmem:[%s731_s3 + $0x70] sm:$0xff]   ;;  %s579_s8 = smov [#allocation2]  }
  0x17   :  { %205 = vmatpush1.bf16.msra.mxu1 %v527_v15  ;;  %226 = vmatprep.mubr.bf16.mxu1 %v578_v20  ;;  %v535_v22 = vld [vmem:[%s731_s3 + $0x38] sm:$0xff]   ;;  %v537_v24 = vld [vmem:[%s731_s3 + $0x30] sm:$0xff]   ;;  %v538_v25 = vld [vmem:[%s731_s3 + $0x68] sm:$0xff]   ;;  %v105_v46 = vshrl.u32 %v104_v45, 7  ;;  %s431_s9 = sshll.u32 %s579_s8, 4  ;;  %s432_s9 = int_to_ptr.vmem [resolvable:$true] %s431_s9 }
  0x18   :  { %206 = vmatprep.subr.bf16.mxu1 %v528_v16  ;;  %477 = vmatprep.subr.bf16.mxu0 %v534_v21  ;;  %v539_v26 = vld [vmem:[%s731_s3 + $0x28] sm:$0xff]   ;;  %v540_v27 = vld [vmem:[%s731_s3 + $0x60] sm:$0xff]   ;;  %v542_v29 = vld [vmem:[%s731_s3 + $0x58] sm:$0xff]   ;;  %p559_p1 = scmp.lt.s32.totalorder %s432_s9, %s432_s9 }
  0x19   :  { %478 = vmatpush3.bf16.msra.mxu0 %v535_v22  ;;  %v541_v28 = vld [vmem:[%s731_s3 + $0x20] sm:$0xff]   ;;  %v543_v30 = vld [vmem:[%s731_s3 + $0x18] sm:$0xff]   ;;  %v544_v31 = vld [vmem:[%s731_s3 + $0x50] sm:$0xff]   ;;  %v106_v47 = vsub.s32 0, %v105_v46  ;;  %v110_v49 = vsub.s32 1, %v105_v46 }
  0x1a   :  { %479 = vmatprep.subr.bf16.mxu0 %v536_v23  ;;  %v545_v32 = vld [vmem:[%s731_s3 + $0x10] sm:$0xff]   ;;  %v439_v33 = vld [vmem:[%s732_s4] ss:$0 sm:$0xff]  ;;  %v546_v41 = vld [vmem:[%s731_s3 + $0x48] sm:$0xff]  }
  0x1b   :  { %207 = vmatpush1.bf16.msra.mxu1 %v530_v17  ;;  %v547_v42 = vld [vmem:[%s731_s3 + $0x8] sm:$0xff]   ;;  %v548_v43 = vld [vmem:[%s731_s3 + $0x40] sm:$0xff]  }
  0x1c   :  { %208 = vmatprep.subr.bf16.mxu1 %v531_v18  ;;  %v549_v44 = vld [vmem:[%s731_s3] sm:$0xff]  }
  0x1d   :  { %480 = vmatpush3.bf16.msra.mxu0 %v537_v24  ;;  %v25_v48 = vld [vmem:[%s732_s4 + $0x1] sm:$0x3]  ;;  %v458_v0 = vld [vmem:[%s732_s4 + $0x3] ss:$0 sm:$0xff]  ;;  %s554_s4 = scalar_lea.vmem %s432_s9, 128 }
  0x1e   :  { %481 = vmatprep.subr.bf16.mxu0 %v538_v25  ;;  %v107_v50 = vrot.slane %v25_v48, %v106_v47  ;;  %v111_v51 = vrot.slane %v25_v48, %v110_v49  ;;  %p555_p0 = scmp.ne.s32.totalorder %s432_s9, %s554_s4  ;;  %p560_p2 = scmp.lt.s32.totalorder %s554_s4, %s554_s4 }
  0x1f   :  { %209 = vmatpush1.bf16.msra.mxu1 %v533_v19 }
  0x20   :  { %p561_p3 = por %p560_p2, %p559_p1 }
  0x21   :  { %482 = vmatpush3.bf16.msra.mxu0 %v539_v26 }
  0x22   :  { %483 = vmatprep.subr.bf16.mxu0 %v540_v27  ;;  %p562_p4 = pnand %p561_p3, %p555_p0 }
  0x25   :  { %484 = vmatpush3.bf16.msra.mxu0 %v541_v28 }
  0x26   :  { %485 = vmatprep.subr.bf16.mxu0 %v542_v29 }
  0x29   :  { %486 = vmatpush3.bf16.msra.mxu0 %v543_v30 }
  0x2a   :  { %487 = vmatprep.subr.bf16.mxu0 %v544_v31 }
  0x2d   :  { %488 = vmatpush3.bf16.msra.mxu0 %v545_v32 }
  0x2e   :  { %489 = vmatprep.subr.bf16.mxu0 %v546_v41 }
  0x31   :  { %490 = vmatpush3.bf16.msra.mxu0 %v547_v42 }
  0x32   :  { %491 = vmatprep.subr.bf16.mxu0 %v548_v43 }
  0x35   :  { %492 = vmatpush3.bf16.msra.mxu0 %v549_v44 }
  0xc5   :  { %v79_v34 = vpop.f32.mrf.mxu0 }
  0xc6   :  { %v80_v35 = vadd.f32 %v439_v33, %v79_v34 }
  0xc7   :  { %v503_v36 = vpop.f32.mrf.mxu0 }
  0xc8   :  { %v85_v37 = vmax.f32 %v80_v35, 0.0 }
  0xc9   :  { %v82_v38 = vpop.f32.mrf.mxu0 }
  0xca   :  { %v86_v39 = vpack.c.bf16 %v85_v37, %v85_v37 }
  0xcb   :  { %v504_v40 = vpop.f32.mrf.mxu0 }
  0xcc   :  { %227 = vmatmul.mubr.bf16.vlgmr.msra.gmra.mxu1 %v86_v39 }
 0x18c   :  { %v228_v52 = vpop.f32.mrf.mxu1 }
 0x18d   :  { %v229_v53 = vadd.f32 %v228_v52, %v107_v50 }
 0x18e   :  { %v230_v54 = vpop.f32.mrf.mxu1 }
 0x18f   :  { %v231_v55 = vadd.f32 %v230_v54, %v111_v51  ;;  %v235_v56 = vmax.f32 %v229_v53, 0.0 }
 0x190   :  { %v232_v57 = vpop.f32.mrf.mxu1 }
 0x191   :  { %v236_v58 = vmax.f32 %v231_v55, 0.0  ;;  %v237_v61 = vpack.c.bf16 %v235_v56, %v235_v56 }
 0x192   :  { %v233_v59 = vpop.f32.mrf.mxu1 }
 0x193   :  { %v238_v60 = vpack.c.bf16 %v236_v58, %v236_v58 }
 0x195   :  { %405 = vmatprep.mubr.bf16.mxu0 %v238_v60 }
 0x196   :  { %406 = vmatmul.mubr.bf16.vlgmr.msra.gmra.mxu0 %v237_v61 }
 0x256   :  { %v493_v62 = vpop.f32.mrf.mxu0 }
 0x258   :  { %v494_v63 = vpop.f32.mrf.mxu0 }
 0x259   :  { %v495_v1 = vadd.f32 %v494_v63, %v493_v62 }
 0x25a   :  { %v496_v2 = vpop.f32.mrf.mxu0 }
 0x25b   :  { %v408_v3 = vadd.f32 %v495_v1, %v458_v0 }
 0x25c   :  { %v497_v4 = vpop.f32.mrf.mxu0 }
 0x25d   :  { %v413_v5 = vsel %vm41_vm1, %v408_v3, -inf }
 0x25e   :  { %414 = vmax.xlane.f32.xlu0 %v413_v5 }
 0x2e7   :  { %v415_v6 = vpop.xlane.xlu0 %414 }
 0x2e8   :  { %v416_v7 = vsub.f32 %v408_v3, %v415_v6 }
 0x2ea   :  { %v417_v8 = vmul.f32 1.442695, %v416_v7 }
 0x2ec   :  { %550 = vpow2.f32 %v417_v8 }
 0x2f9   :  { %v551_v9 = vpop.eup %550 }
 0x2fa   :  { %v419_v10 = vsel %vm41_vm1, %v551_v9, 0.0 }
 0x2fb   :  { %420 = vadd.xlane.f32.xlu0 %v419_v10 }
 0x384   :  { %v421_v11 = vpop.xlane.xlu0 %420 }
 0x385   :  { %552 = vrcp.f32 %v421_v11 }
 0x392   :  { %v553_v12 = vpop.eup %552 }
 0x393   :  { %v423_v13 = vmul.f32 %v553_v12, %v551_v9 }
 0x395   :  { %424 = vst.msk [vmem:[#allocation2] sm:$0xff] %vm41_vm1, %v423_v13 }
 0x396   :  { %565 = shalt.err (!%p562_p4)
}
 0x397   :  { %434 = dma.vmem_to_hbm [thread:$0]  %s432_s9, 128, %s733_s5, [#allocation3]  }
 0x398   :  { %574 = dma.done.wait [#allocation3], 128  }
 0x399   :  { %575 = vsyncadd [#allocation3], 4294967168 }
 0x39a   :  { %438 = vsyncpa [#allocation3], 1 }

</bundles_post_ra>
